<compile_context>
chip_gen: v5e
topology: v5e:2x2
jax: 0.10.0
libtpu: 0.0.40
codegen_flags: <defaults>
</compile_context>

<pallas_src>
import math

import jax
import jax.numpy as jnp
from jax.experimental import pallas as pl
from jax.experimental.pallas import tpu as pltpu


def _round_up(x, m):
    return ((x + m - 1) // m) * m


def _vmem_budget():
    """~75% of this generation's VMEM (v5e/v6e: 128 MiB, v7x: 64 MiB)."""
    cap = 64 * 1024 * 1024  # conservative fallback (v7x)
    try:
        cap = int(pltpu.get_tpu_info().vmem_capacity_bytes)
    except Exception:
        pass
    return max(int(0.75 * cap), 16 * 1024 * 1024)


def _geometry(N, B):
    """Tile geometry: (small_path, tm, tk, n_rows_pad, n_k_pad)."""
    if N <= 512:
        # Whole adjacency row block per batch; full-dim blocks => no padding.
        return True, N, N, N, N
    tk = 512 if N % 512 == 0 else 256
    n_kp = _round_up(N, tk)            # contraction axis padded to tk only
    n_rp = _round_up(N, 256)           # row axis padded to 256 only
    cands = [c for c in range(256, min(2048, n_rp) + 1, 256) if n_rp % c == 0]
    tm = max(cands)
    # v7x has 2 TensorCores sharded over "parallel" axes: keep >= 2 steps.
    if B * (n_rp // tm) < 2:
        two_step = [c for c in cands if n_rp // c >= 2]
        if two_step:
            tm = max(two_step)
    return False, tm, tk, n_rp, n_kp


def prepare_adj(adj, *, compute_dtype=jnp.bfloat16):
    """Pad + cast adj once (adj is layer-invariant across a GCN stack) so each
    graph_convolution call only streams the minimal bf16 bytes from HBM."""
    B, N, N2 = adj.shape
    assert N == N2, "adj must be (B, N, N)"
    _, _, _, n_rp, n_kp = _geometry(N, B)
    adj = adj.astype(compute_dtype)
    if (n_rp, n_kp) != (N, N):
        adj = jnp.pad(adj, ((0, 0), (0, n_rp - N), (0, n_kp - N)))
    return adj


# ---------------------------------------------------------------------------
# Fused kernels.  All casts to the compute dtype happen in-kernel, right after
# the DMA, so the wrapper never round-trips adj/x through HBM just to cast.
# ---------------------------------------------------------------------------
def _gcn_small_kernel(adj_ref, x_ref, w_ref, o_ref):
    cdt = w_ref.dtype
    s = jnp.dot(x_ref[0].astype(cdt), w_ref[...],
                preferred_element_type=jnp.float32).astype(cdt)
    out = jnp.dot(adj_ref[0].astype(cdt), s, preferred_element_type=jnp.float32)
    o_ref[0] = out.astype(o_ref.dtype)


def _gcn_small_kernel_bias(adj_ref, x_ref, w_ref, b_ref, o_ref):
    cdt = w_ref.dtype
    s = jnp.dot(x_ref[0].astype(cdt), w_ref[...],
                preferred_element_type=jnp.float32).astype(cdt)
    out = jnp.dot(adj_ref[0].astype(cdt), s, preferred_element_type=jnp.float32)
    o_ref[0] = (out + b_ref[...]).astype(o_ref.dtype)


def _gcn_tiled_kernel(adj_ref, x_ref, w_ref, o_ref, acc_ref):
    k = pl.program_id(2)

    @pl.when(k == 0)
    def _():
        acc_ref[...] = jnp.zeros_like(acc_ref)

    cdt = w_ref.dtype
    s = jnp.dot(x_ref[0].astype(cdt), w_ref[...],
                preferred_element_type=jnp.float32).astype(cdt)
    acc_ref[...] += jnp.dot(adj_ref[0].astype(cdt), s,
                            preferred_element_type=jnp.float32)

    @pl.when(k == pl.num_programs(2) - 1)
    def _():
        o_ref[0] = acc_ref[...].astype(o_ref.dtype)


def _gcn_tiled_kernel_bias(adj_ref, x_ref, w_ref, b_ref, o_ref, acc_ref):
    k = pl.program_id(2)

    @pl.when(k == 0)
    def _():
        acc_ref[...] = jnp.zeros_like(acc_ref)

    cdt = w_ref.dtype
    s = jnp.dot(x_ref[0].astype(cdt), w_ref[...],
                preferred_element_type=jnp.float32).astype(cdt)
    acc_ref[...] += jnp.dot(adj_ref[0].astype(cdt), s,
                            preferred_element_type=jnp.float32)

    @pl.when(k == pl.num_programs(2) - 1)
    def _():
        o_ref[0] = (acc_ref[...] + b_ref[...]).astype(o_ref.dtype)


# ---------------------------------------------------------------------------
# Wrapper
# ---------------------------------------------------------------------------
def graph_convolution(x, adj, weight, bias=None, *,
                      compute_dtype=jnp.bfloat16, out_dtype=None):
    """Pallas GraphConvolution.forward.

    x: (B, N, Fin), adj: (B, N, N) raw or output of prepare_adj(),
    weight: (Fin, Fout), bias: (1, 1, Fout) or None.
    Returns (B, N, Fout) in out_dtype (default x.dtype).  MXU matmuls use
    compute_dtype operands (default bf16) with f32 accumulation; pass
    compute_dtype=jnp.float32 for a full-precision path.
    """
    B, N, Fin = x.shape
    assert weight.shape[0] == Fin
    Fout = weight.shape[1]
    out_dtype = x.dtype if out_dtype is None else jnp.dtype(out_dtype)

    small, tm, tk, n_rp, n_kp = _geometry(N, B)
    Fout_p = _round_up(Fout, 128)                 # lane-dense output stores

    # --- tiny params: cast + lane-pad in the wrapper ------------------------
    w = weight.astype(compute_dtype)
    if Fout_p != Fout:
        w = jnp.pad(w, ((0, 0), (0, Fout_p - Fout)))
    if bias is not None:
        b = bias.reshape(1, Fout).astype(jnp.float32)
        if Fout_p != Fout:
            b = jnp.pad(b, ((0, 0), (0, Fout_p - Fout)))

    # --- adj: reuse a prepared (padded+cast) array, else pad only if needed,
    #          casting to bf16 inside the kernel right after the DMA ---------
    if adj.shape == (B, n_rp, n_kp):
        adj_op = adj                               # prepared / already aligned
    else:
        assert adj.shape == (B, N, N), "adj must be (B, N, N) or prepare_adj()"
        if (n_rp, n_kp) == (N, N):
            adj_op = adj                           # no pad: in-kernel cast only
        else:
            adj_op = jnp.pad(adj.astype(compute_dtype),
                             ((0, 0), (0, n_rp - N), (0, n_kp - N)))

    # --- x (tiny vs adj): pad contraction rows only if the tiling needs it --
    x_op = x if n_kp == N else jnp.pad(x, ((0, 0), (0, n_kp - N), (0, 0)))

    c_elt = jnp.dtype(compute_dtype).itemsize
    adj_elt = adj_op.dtype.itemsize
    x_elt = x_op.dtype.itemsize
    o_elt = jnp.dtype(out_dtype).itemsize
    Fin_l = _round_up(Fin, 128)                    # lane-padded VMEM estimate
    budget = _vmem_budget()

    if small:
        # -------- single fused step per batch, no accumulator ---------------
        in_specs = [
            pl.BlockSpec((1, N, N), lambda bb: (bb, 0, 0)),
            pl.BlockSpec((1, N, Fin), lambda bb: (bb, 0, 0)),
            pl.BlockSpec((Fin, Fout_p), lambda bb: (0, 0)),
        ]
        operands = [adj_op, x_op, w]
        kern = _gcn_small_kernel
        if bias is not None:
            in_specs.append(pl.BlockSpec((1, Fout_p), lambda bb: (0, 0)))
            operands.append(b)
            kern = _gcn_small_kernel_bias

        need = (2 * N * _round_up(N, 128) * adj_elt
                + 2 * N * Fin_l * x_elt
                + 2 * Fin * Fout_p * c_elt
                + 2 * N * Fout_p * o_elt
                + 2 * 8 * Fout_p * 4)
        vmem_limit = int(min(max(2 * need, 16 * 1024 * 1024), budget))

        out_p = pl.pallas_call(
            kern,
            out_shape=jax.ShapeDtypeStruct((B, N, Fout_p), out_dtype),
            grid_spec=pltpu.PrefetchScalarGridSpec(
                num_scalar_prefetch=0,
                grid=(B,),
                in_specs=in_specs,
                out_specs=pl.BlockSpec((1, N, Fout_p), lambda bb: (bb, 0, 0)),
            ),
            compiler_params=pltpu.CompilerParams(
                dimension_semantics=("parallel",),
                vmem_limit_bytes=vmem_limit,
            ),
            cost_estimate=pl.CostEstimate(
                flops=int(2 * B * N * Fin * Fout_p + 2 * B * N * N * Fout_p),
                transcendentals=0,
                bytes_accessed=int(adj_op.size * adj_elt + x_op.size * x_elt
                                   + w.size * c_elt + B * N * Fout_p * o_elt),
            ),
        )(*operands)
        return out_p[:, :N, :Fout]

    # -------- tiled fused path: grid (B, rows, K), f32 accumulator ----------
    def footprint(tm_):
        return (2 * tm_ * tk * adj_elt             # adj tiles (double-buffered)
                + 2 * tk * Fin_l * x_elt           # x tiles
                + 2 * Fin * Fout_p * c_elt         # resident weight
                + 2 * tm_ * Fout_p * o_elt         # output tiles
                + tm_ * Fout_p * 4                 # f32 accumulator
                + 2 * 8 * Fout_p * 4)              # bias

    while 2 * footprint(tm) > budget and tm > 256:
        tm //= 2                                   # divisors of tm still divide n_rp

    grid = (B, n_rp // tm, n_kp // tk)
    in_specs = [
        pl.BlockSpec((1, tm, tk), lambda bb, i, k: (bb, i, k)),
        pl.BlockSpec((1, tk, Fin), lambda bb, i, k: (bb, k, 0)),
        pl.BlockSpec((Fin, Fout_p), lambda bb, i, k: (0, 0)),
    ]
    operands = [adj_op, x_op, w]
    kern = _gcn_tiled_kernel
    if bias is not None:
        in_specs.append(pl.BlockSpec((1, Fout_p), lambda bb, i, k: (0, 0)))
        operands.append(b)
        kern = _gcn_tiled_kernel_bias

    vmem_limit = int(min(max(2 * footprint(tm), 16 * 1024 * 1024), budget))
    n_row_tiles = n_rp // tm
    cost = pl.CostEstimate(
        flops=int(2 * B * n_row_tiles * n_kp * Fin * Fout_p
                  + 2 * B * n_rp * n_kp * Fout_p),
        transcendentals=0,
        bytes_accessed=int(adj_op.size * adj_elt
                           + n_row_tiles * x_op.size * x_elt
                           + w.size * c_elt
                           + B * n_rp * Fout_p * o_elt),
    )

    out_p = pl.pallas_call(
        kern,
        out_shape=jax.ShapeDtypeStruct((B, n_rp, Fout_p), out_dtype),
        grid_spec=pltpu.PrefetchScalarGridSpec(
            num_scalar_prefetch=0,
            grid=grid,
            in_specs=in_specs,
            out_specs=pl.BlockSpec((1, tm, Fout_p), lambda bb, i, k: (bb, i, 0)),
            scratch_shapes=[pltpu.VMEM((tm, Fout_p), jnp.float32)],
        ),
        compiler_params=pltpu.CompilerParams(
            dimension_semantics=("parallel", "parallel", "arbitrary"),
            vmem_limit_bytes=vmem_limit,
        ),
        cost_estimate=cost,
    )(*operands)
    return out_p[:, :N, :Fout]


def _reference(x, adj, weight, bias, compute_dtype=jnp.bfloat16):
    """Pure-JAX reference matching the kernel numerics (bf16 ops, f32 acc)."""
    support = jnp.matmul(
        x.astype(compute_dtype), weight.astype(compute_dtype),
        preferred_element_type=jnp.float32,
    ).astype(compute_dtype)
    out = jnp.matmul(
        adj.astype(compute_dtype), support, preferred_element_type=jnp.float32
    )
    if bias is not None:
        out = out + bias
    return out.astype(x.dtype)


if __name__ == "__main__":
    key = jax.random.PRNGKey(0)
    kx, kadj, kw, kb, kx2, kadj2 = jax.random.split(key, 6)

    # --- small-N path (module-typical tiny shapes) ---------------------------
    B, N, Fin, Fout = 2, 16, 8, 32
    stdv = 1.0 / math.sqrt(Fout)          # reset_parameters(): U(-stdv, stdv)
    x = jax.random.normal(kx, (B, N, Fin), dtype=jnp.float32)
    adj = jax.random.uniform(kadj, (B, N, N), dtype=jnp.float32)
    weight = jax.random.uniform(kw, (Fin, Fout), jnp.float32, -stdv, stdv)
    bias = jax.random.uniform(kb, (1, 1, Fout), jnp.float32, -stdv, stdv)

    out_b = jax.block_until_ready(graph_convolution(x, adj, weight, bias))
    out_nb = jax.block_until_ready(graph_convolution(x, adj, weight, None))
    ref_b = _reference(x, adj, weight, bias)
    ref_nb = _reference(x, adj, weight, None)
    assert out_b.shape == (B, N, Fout) and out_nb.shape == (B, N, Fout)
    assert jnp.allclose(out_b, ref_b, atol=1e-2, rtol=1e-2), "small bias mismatch"
    assert jnp.allclose(out_nb, ref_nb, atol=1e-2, rtol=1e-2), "small no-bias mismatch"

    # --- tiled large-N path (exercises padding + K accumulation) -------------
    B2, N2 = 2, 520
    x2 = jax.random.normal(kx2, (B2, N2, Fin), dtype=jnp.float32)
    adj2 = jax.random.uniform(kadj2, (B2, N2, N2), dtype=jnp.float32)
    out2 = jax.block_until_ready(graph_convolution(x2, adj2, weight, bias))
    ref2 = _reference(x2, adj2, weight, bias)
    assert out2.shape == (B2, N2, Fout)
    assert jnp.allclose(out2, ref2, atol=5e-2, rtol=2e-2), "tiled mismatch"

    # pre-padded/cast adj (reused across a GCN stack) gives the same result
    adj2_prep = prepare_adj(adj2)
    out2_prep = jax.block_until_ready(graph_convolution(x2, adj2_prep, weight, bias))
    assert jnp.allclose(out2_prep, ref2, atol=5e-2, rtol=2e-2), "prepared adj mismatch"

    print("KERNEL_OK")
</pallas_src>

<mosaic_0001>
module attributes {stable_mosaic.version = 11 : i64} {
  func.func @_gcn_small_kernel_bias(%arg0: i32, %arg1: memref<1x16x16xf32, #tpu.memory_space<vmem>>, %arg2: memref<1x16x8xf32, #tpu.memory_space<vmem>>, %arg3: memref<8x128xbf16, #tpu.memory_space<vmem>>, %arg4: memref<1x128xf32, #tpu.memory_space<vmem>>, %arg5: memref<1x16x128xf32, #tpu.memory_space<vmem>>) attributes {dimension_semantics = [#tpu.dimension_semantics<parallel>], iteration_bounds = array<i64: 2>, scalar_prefetch = 0 : i64, scratch_operands = 0 : i64, tpu.core_type = #tpu.core_type<tc>, window_params = [{transform_indices = @transform_0, window_bounds = array<i64: 1, 16, 16>}, {transform_indices = @transform_1, window_bounds = array<i64: 1, 16, 8>}, {pipeline_mode = #tpu.pipeline_mode<synchronous>, transform_indices = @transform_2, window_bounds = array<i64: 8, 128>}, {pipeline_mode = #tpu.pipeline_mode<synchronous>, transform_indices = @transform_3, window_bounds = array<i64: 1, 128>}, {transform_indices = @transform_4, window_bounds = array<i64: 1, 16, 128>}]} {
    %c0 = arith.constant 0 : index
    %c0_0 = arith.constant 0 : index
    %c0_1 = arith.constant 0 : index
    %0 = vector.load %arg2[%c0, %c0_0, %c0_1] : memref<1x16x8xf32, #tpu.memory_space<vmem>>, vector<1x16x8xf32>
    %1 = vector.shape_cast %0 : vector<1x16x8xf32> to vector<16x8xf32>
    %2 = arith.truncf %1 : vector<16x8xf32> to vector<16x8xbf16>
    %c0_2 = arith.constant 0 : index
    %c0_3 = arith.constant 0 : index
    %3 = vector.load %arg3[%c0_2, %c0_3] : memref<8x128xbf16, #tpu.memory_space<vmem>>, vector<8x128xbf16>
    %cst = arith.constant dense<0.000000e+00> : vector<16x128xf32>
    %4 = tpu.matmul %2, %3, %cst {dimension_numbers = #tpu.dot_dimension_numbers<[1], [0], [0], [1], [0, 0, 1, 1], [], []>} : vector<16x8xbf16>, vector<8x128xbf16>, vector<16x128xf32> -> vector<16x128xf32>
    %5 = arith.truncf %4 : vector<16x128xf32> to vector<16x128xbf16>
    %c0_4 = arith.constant 0 : index
    %c0_5 = arith.constant 0 : index
    %c0_6 = arith.constant 0 : index
    %6 = vector.load %arg1[%c0_4, %c0_5, %c0_6] : memref<1x16x16xf32, #tpu.memory_space<vmem>>, vector<1x16x16xf32>
    %7 = vector.shape_cast %6 : vector<1x16x16xf32> to vector<16x16xf32>
    %8 = arith.truncf %7 : vector<16x16xf32> to vector<16x16xbf16>
    %cst_7 = arith.constant dense<0.000000e+00> : vector<16x128xf32>
    %9 = tpu.matmul %8, %5, %cst_7 {dimension_numbers = #tpu.dot_dimension_numbers<[1], [0], [0], [1], [0, 0, 1, 1], [], []>} : vector<16x16xbf16>, vector<16x128xbf16>, vector<16x128xf32> -> vector<16x128xf32>
    %c0_8 = arith.constant 0 : index
    %c0_9 = arith.constant 0 : index
    %10 = vector.load %arg4[%c0_8, %c0_9] : memref<1x128xf32, #tpu.memory_space<vmem>>, vector<1x128xf32>
    %11 = vector.broadcast %10 : vector<1x128xf32> to vector<16x128xf32>
    %12 = arith.addf %9, %11 : vector<16x128xf32>
    %c0_10 = arith.constant 0 : index
    %c0_11 = arith.constant 0 : index
    %c0_12 = arith.constant 0 : index
    %13 = vector.load %arg5[%c0_10, %c0_11, %c0_12] : memref<1x16x128xf32, #tpu.memory_space<vmem>>, vector<1x16x128xf32>
    %14 = vector.shape_cast %13 : vector<1x16x128xf32> to vector<16x128xf32>
    %15 = vector.shape_cast %12 : vector<16x128xf32> to vector<1x16x128xf32>
    tpu.vector_store %arg5[%c0_10, %c0_11, %c0_12], %15 {strides = array<i32>} : memref<1x16x128xf32, #tpu.memory_space<vmem>>, vector<1x16x128xf32>,
    return
  }
  func.func @transform_0(%arg0: i32) -> (i32, i32, i32) {
    %c0_i32 = arith.constant 0 : i32
    %c0_i32_0 = arith.constant 0 : i32
    %c0_i32_1 = arith.constant 0 : i32
    return %arg0, %c0_i32, %c0_i32_0 : i32, i32, i32
  }
  func.func @transform_1(%arg0: i32) -> (i32, i32, i32) {
    %c0_i32 = arith.constant 0 : i32
    %c0_i32_0 = arith.constant 0 : i32
    %c0_i32_1 = arith.constant 0 : i32
    return %arg0, %c0_i32, %c0_i32_0 : i32, i32, i32
  }
  func.func @transform_2(%arg0: i32) -> (i32, i32) {
    %c0_i32 = arith.constant 0 : i32
    %c0_i32_0 = arith.constant 0 : i32
    %c0_i32_1 = arith.constant 0 : i32
    return %c0_i32, %c0_i32_0 : i32, i32
  }
  func.func @transform_3(%arg0: i32) -> (i32, i32) {
    %c0_i32 = arith.constant 0 : i32
    %c0_i32_0 = arith.constant 0 : i32
    %c0_i32_1 = arith.constant 0 : i32
    return %c0_i32, %c0_i32_0 : i32, i32
  }
  func.func @transform_4(%arg0: i32) -> (i32, i32, i32) {
    %c0_i32 = arith.constant 0 : i32
    %c0_i32_0 = arith.constant 0 : i32
    %c0_i32_1 = arith.constant 0 : i32
    return %arg0, %c0_i32, %c0_i32_0 : i32, i32, i32
  }
}

</mosaic_0001>

<bundles_post_ra>
// kernel: tpu_custom_call.1
= control target key start
LH: loop header
LB: loop body
LE: loop exit
PB: predicated region body
PF: predicated region fallthrough
CT: control target
= control target key end

     0   :  { %9 = vsyncpa [#allocation3], 0  ;;  %s607_s0 = inlined_call_operand.vmem [shape: f32[2,16,16], index: 0, kind: input, shape index: {}]   ;;  %s608_s1 = inlined_call_operand.vmem [shape: f32[2,16,8], index: 1, kind: input, shape index: {}]   ;;  %s609_s2 = inlined_call_operand.vmem [shape: bf16[8,128], index: 2, kind: input, shape index: {}]   ;;  %s610_s3 = inlined_call_operand.vmem [shape: f32[1,128], index: 3, kind: input, shape index: {}]   ;;  %s611_s4 = inlined_call_operand.hbm [shape: f32[2,16,128], index: 4, kind: output, shape index: {}]  }
   0x1   :  { %11 = vsyncpa [#allocation3 + $0x1], 0  ;;  %s513_s15 = smov 0   ;;  %s515_s16 = smov 0  }
   0x2   :  { %s517_s17 = smov 0   ;;  %s519_s18 = smov 0  }
   0x3 LB: > { %s534_s19 = sadd.s32 4294967295, %s484_s18   ;;  %s361_s20 = sadd.s32 4294967294, %s484_s18   ;;  %s484_s18 = sphi %s519_s18, %s617_s18   ;;  %s480_s17 = sphi %s517_s17, %s616_s17   ;;  %s476_s16 = sphi %s515_s16, %s615_s16   ;;  %s472_s15 = sphi %s513_s15, %s614_s15  }
   0x4   : > { %s538_s21 = sadd.s32 1, %s484_s18   ;;  %s118_s22 = sadd.s32 1, %s480_s17 }
   0x5   : > { %s115_s23 = ssub.s32 %s484_s18, %s538_s21  ;;  %p128_p0 = scmp.ne.s32.totalorder %s480_s17, %s476_s16 }
   0x6   : > { %p116_p1 = scmp.eq.s32.totalorder %s115_s23, 0  ;;  %p129_p2 = scmp.eq.s32.totalorder %s534_s19, 1 }
   0x7   : > { %p134_p3 = scmp.ne.s32.totalorder %s476_s16, %s472_s15  ;;  %p135_p4 = scmp.eq.s32.totalorder %s361_s20, 1 }
   0x8   : > { %s549_s24 = scalar_select %p116_p1, %s480_s17, %s118_s22  }
   0x9   : > { %p551_p5 = por %p129_p2, %p128_p0  ;;  %p555_p6 = por %p135_p4, %p134_p3 }
   0xa   : > { %p364_p7 = scmp.ge.s32.totalorder %s484_s18, 1  ;;  %p175_p8 = scmp.lt.s32.totalorder %s484_s18, 3 }
   0xc   : > { %p176_p9 = pnand %p364_p7, %p175_p8 }
   0xd   : > { %p206_p10 = scmp.lt.s32.totalorder (!%p176_p9), %s534_s19, 1  ;;  %s203_s11 = sand.u32 (!%p176_p9), 1, %s476_s16  }
   0xe   : > { %179 = sbr.rel (%p176_p9) target bundleno = 305 (0x131), region = 36  ;;  %s365_s12 = sshll.u32 (!%p176_p9), %s203_s11, 4 }
   0xf   : > { %s379_s20 = sshll.u32 (!%p176_p9), %s534_s19, 4  ;;  %s205_s28 = scalar_lea.vmem (!%p176_p9), [#allocation2], %s365_s12 }
  0x10   : > { %s283_s27 = scalar_lea.hbm (!%p176_p9), %s611_s4, %s379_s20  ;;  %s272_s5 = scalar_lea.sflag (!%p176_p9), [#allocation3], %s203_s11 }
  0x11   : > { %s442_s9 = scalar_lea.hbm (!%p176_p9), %s611_s4, 32 }
  0x13   : > { %v220_v0 = vld [vmem:[%s609_s2] sm:$0xf]  ;;  %vm225_vm0 = vcmask 1043456   ;;  %s207_s29 = scalar_select %p206_p10, %s534_s19, 1  ;;  %vm221_vm1 = vcmask 64512   ;;  %vm251_vm2 = vcmask 130048  }
  0x14   : > { %v227_v1 = vsel %vm225_vm0, %v220_v0, 0  ;;  %v421_v11 = vld [vmem:[%s610_s3] ss:$0 sm:$0xff] }
  0x15   : > { %236 = vmatpush.bf16.msra.mxu0 %v227_v1  ;;  %s377_s30 = sshll.u32 %s207_s29, 4  ;;  %s284_s29 = sshll.u32 %s205_s28, 4  ;;  %s285_s29 = int_to_ptr.vmem [resolvable:$true] %s284_s29 }
  0x16   : > { %s215_s7 = scalar_lea.vmem %s608_s1, %s377_s30  ;;  %s210_s10 = scalar_lea.vmem %s607_s0, %s377_s30 }
  0x17   : > { %v217_v2 = vld [vmem:[%s215_s7] sm:$0xff]  ;;  %v218_v3 = vld [vmem:[%s215_s7 + $0x8] sm:$0xff]  ;;  %s286_s30 = sshll.u32 %s283_s27, 4  ;;  %s287_s30 = int_to_ptr.hbm [resolvable:$true] %s286_s30 }
  0x18   : > { %v219_v4 = vpack.c.bf16 %v218_v3, %v217_v2  ;;  %v244_v6 = vld [vmem:[%s210_s10] sm:$0xff]  ;;  %v245_v7 = vld [vmem:[%s210_s10 + $0x8] sm:$0xff]  ;;  %s436_s6 = sshra.s32 %s287_s30, 4  ;;  %s437_s6 = int_to_ptr.hbm [resolvable:$true] %s436_s6 }
  0x19   : > { %v246_v10 = vpack.c.bf16 %v245_v7, %v244_v6  ;;  %s438_s19 = scalar_lea.hbm %s437_s6, 16  ;;  %p443_p0 = scmp.lt.s32.totalorder %s437_s6, %s611_s4 }
  0x1a   : > { %370 = vmatmul.msk.bf16.vlgmr.msra.gmra.mxu0 %vm221_vm1, %v219_v4  ;;  %p439_p11 = scmp.ne.s32.totalorder %s437_s6, %s438_s19  ;;  %p444_p1 = scmp.lt.s32.totalorder %s442_s9, %s438_s19 }
  0x1c   : > { %p440_p12 = pnand %p439_p11, %p551_p5  ;;  %p445_p2 = por %p444_p1, %p443_p0 }
  0x1e   : > { %p441_p13 = pneg %p440_p12 }
  0x20   : > { %p446_p3 = pnand %p445_p2, %p441_p13 }
  0x97   : > { %v238_v5 = vpop.f32.mrf.mxu0 }
  0x9f   : > { %v240_v8 = vpop.f32.mrf.mxu0 }
  0xa0   : > { %v243_v9 = vpack.c.bf16 %v240_v8, %v238_v5 }
  0xa2   : > { %262 = vmatpush.bf16.msra.mxu1 %v243_v9 }
  0xa5   : > { %371 = vmatmul.msk.bf16.vlgmr.msra.gmra.mxu1 %vm251_vm2, %v246_v10 }
 0x122   : > { %v264_v12 = vpop.f32.mrf.mxu1 }
 0x123   : > { %v265_v13 = vadd.f32 %v421_v11, %v264_v12 }
 0x125   : > { %269 = vst [vmem:[%s205_s28] sm:$0xff] %v265_v13 }
 0x12a   : > { %v266_v14 = vpop.f32.mrf.mxu1 }
 0x12b   : > { %v267_v15 = vadd.f32 %v421_v11, %v266_v14 }
 0x12d   : > { %270 = vst [vmem:[%s205_s28 + $0x8] sm:$0xff] %v267_v15 }
 0x12e   : > { %449 = shalt.err (!%p446_p3)
}
 0x12f   : > { %s486_s11 = smov 128   ;;  %s487_s13 = smov 8  }
 0x130   : > { %380 = dma.vmem_to_hbm [thread:$0]  (%p551_p5), %s285_s29, 256, %s287_s30, %s272_s5, %s486_s11, %s486_s11, %s487_s13  }
 0x131 PF: > { %p386_p4 = scmp.ge.s32.totalorder %s484_s18, 2  ;;  %s301_s14 = sand.u32 1, %s472_s15  }
 0x132   : > { %s302_s20 = scalar_lea.sflag [#allocation3], %s301_s14 }
 0x133   : > { %p383_p7 = pnand %p386_p4, %p555_p6 }
 0x135   : > { %p384_p8 = pneg %p383_p7 }
 0x137   : > { %467 = dma.done.wait (%p384_p8), %s302_s20, 256  }
 0x138   : > { %469 = vsyncadd (%p384_p8), %s302_s20, 4294967040  ;;  %p14_p9 = scmp.ge.s32.totalorder %s538_s21, 4   ;;  %s614_s15 = smov %s476_s16 }
 0x139   : > { %s615_s16 = smov %s480_s17  ;;  %s616_s17 = smov %s549_s24 }
 0x13a   : > { %s617_s18 = smov %s538_s21  ;;  %16 = sbr.rel (!%p14_p9) target bundleno = 3 (0x3), region = 74 }
 0x13f   :  { %308 = vsyncpa [#allocation3], 1 }
 0x140   :  { %310 = vsyncpa [#allocation3 + $0x1], 1 }

</bundles_post_ra>
